<compile_context>
chip_gen: v5e
topology: v5e:2x2
jax: 0.10.0
libtpu: 0.0.40
codegen_flags: <defaults>
</compile_context>

<pallas_src>
import numpy as np
import jax
import jax.numpy as jnp
from jax.experimental import pallas as pl
from jax.experimental.pallas import tpu as pltpu

_EPS = 1e-5  # PyTorch BatchNorm default eps


# --------------------------------------------------------------------------- #
# Pallas kernels
# --------------------------------------------------------------------------- #
def _mask_kernel(tok_ref, w_all_ref, b_all_ref, wr_ref, br_ref, o_ref):
    # tok_ref : (1, Cin, tile)  channels-first low-res tokens [x_pool ; g1 ; g2]
    # w_all   : (2*Cn, Cin)     block-structured folded conv+BN weights (transposed)
    # b_all   : (2*Cn, 1)
    # wr      : (3, 2*Cn)       folded Conv_relu + BN_relu (transposed)
    # br      : (3, 1)
    # o_ref   : (1, 2, tile)    softmax channels 0 and 1, tokens on lanes
    t = tok_ref[0]                                                     # (Cin, tile)
    h = jnp.dot(w_all_ref[...], t, preferred_element_type=jnp.float32) + b_all_ref[...]
    h = jnp.maximum(h, 0.0)                                            # ReLU
    logits = (jnp.dot(wr_ref[...], h, preferred_element_type=jnp.float32)
              + br_ref[...])                                           # (3, tile)
    # Channel softmax over the 3 sublane rows: explicit row ops, no XLU reduce.
    l0, l1, l2 = logits[0:1], logits[1:2], logits[2:3]
    m = jnp.maximum(jnp.maximum(l0, l1), l2)
    e = jnp.exp(logits - m)                                            # (3, tile)
    inv = pl.reciprocal(e[0:1] + e[1:2] + e[2:3], approx=True)
    o_ref[0] = e[0:2] * inv                                            # only ch 0,1 consumed


def _apply_kernel(x_ref, m_ref, o1_ref, o2_ref):
    # x_ref : (1, Cx, S_tile)   x_in, channels-first, spatial flattened (lane-dense)
    # m_ref : (1, 2,  S_tile)   both upsampled masks
    x = x_ref[...]
    m = m_ref[...]
    o1_ref[...] = x * m[:, 0:1, :]
    o2_ref[...] = x * m[:, 1:2, :]


# --------------------------------------------------------------------------- #
# Tile planning
# --------------------------------------------------------------------------- #
def _round_up(x, m):
    return ((x + m - 1) // m) * m


def _plan_spatial(S, cap, min_steps=1):
    """Pick a lane tile (multiple of 128) and a possibly padded extent S_pad.

    Prefers an exact multiple-of-128 divisor of S (no padding); otherwise pads
    S up to a multiple of a cap-bounded tile.  Never returns the whole array
    as a single oversized block.
    """
    cap = max(128, (cap // 128) * 128)
    limit = min(cap, (S // 128) * 128) if S >= 128 else 0
    t = limit
    while t >= 128:
        if S % t == 0 and S // t >= min_steps:
            return t, S
        t -= 128
    # Fallback: pad S to a multiple of a cap-bounded tile.
    t = min(cap, _round_up(S, 128))
    while (_round_up(S, t) // t) < min_steps and t > 128:
        t = max(128, ((t // 2) // 128) * 128)
    return t, _round_up(S, t)


# --------------------------------------------------------------------------- #
# Pallas wrappers
# --------------------------------------------------------------------------- #
def mask_pallas(tokens, w_all_t, b_all, w_relu_t, b_relu, Sl):
    """tokens: (B, Cin, Sl) channels-first. Returns (B, 2, Sl) softmax masks."""
    B, Cin, _ = tokens.shape
    C2 = w_all_t.shape[0]
    min_steps = 2 if B == 1 else 1
    tile, Sl_pad = _plan_spatial(Sl, cap=16384, min_steps=min_steps)
    if Sl_pad != Sl:
        tokens = jnp.pad(tokens, ((0, 0), (0, 0), (0, Sl_pad - Sl)))

    out = pl.pallas_call(
        _mask_kernel,
        out_shape=jax.ShapeDtypeStruct((B, 2, Sl_pad), jnp.float32),
        grid=(B, Sl_pad // tile),
        in_specs=[
            pl.BlockSpec((1, Cin, tile), lambda b, s: (b, 0, s)),
            pl.BlockSpec((C2, Cin), lambda b, s: (0, 0)),
            pl.BlockSpec((C2, 1), lambda b, s: (0, 0)),
            pl.BlockSpec((3, C2), lambda b, s: (0, 0)),
            pl.BlockSpec((3, 1), lambda b, s: (0, 0)),
        ],
        out_specs=pl.BlockSpec((1, 2, tile), lambda b, s: (b, 0, s)),
        compiler_params=pltpu.CompilerParams(
            dimension_semantics=("parallel", "parallel")),
    )(tokens, w_all_t, b_all, w_relu_t, b_relu)

    if Sl_pad != Sl:
        out = out[:, :, :Sl]
    return out


def apply_masks_pallas(x_flat, masks):
    """x_flat: (B, Cx, S); masks: (B, 2, S).  Returns (x*mask0, x*mask1)."""
    B, Cx, S = x_flat.shape
    min_steps = 2 if B == 1 else 1
    # Double-buffered VMEM budget ~8 MiB: 2 * (3*Cx + 2) * tile * 4B <= budget.
    budget = 8 * 1024 * 1024
    cap = max(128, min(65536, budget // (8 * (3 * Cx + 2))))
    tile, S_pad = _plan_spatial(S, cap=cap, min_steps=min_steps)
    if S_pad != S:
        x_flat = jnp.pad(x_flat, ((0, 0), (0, 0), (0, S_pad - S)))
        masks = jnp.pad(masks, ((0, 0), (0, 0), (0, S_pad - S)))

    out_sd = jax.ShapeDtypeStruct((B, Cx, S_pad), jnp.float32)
    o1, o2 = pl.pallas_call(
        _apply_kernel,
        out_shape=(out_sd, out_sd),
        grid=(B, S_pad // tile),
        in_specs=[
            pl.BlockSpec((1, Cx, tile), lambda b, s: (b, 0, s)),
            pl.BlockSpec((1, 2, tile), lambda b, s: (b, 0, s)),
        ],
        out_specs=(
            pl.BlockSpec((1, Cx, tile), lambda b, s: (b, 0, s)),
            pl.BlockSpec((1, Cx, tile), lambda b, s: (b, 0, s)),
        ),
        compiler_params=pltpu.CompilerParams(
            dimension_semantics=("parallel", "parallel")),
    )(x_flat, masks)

    if S_pad != S:
        o1 = o1[:, :, :S]
        o2 = o2[:, :, :S]
    return o1, o2


# --------------------------------------------------------------------------- #
# Plain-JAX glue
# --------------------------------------------------------------------------- #
def _upsample2x_trilinear_align_corners(x):
    # x: (..., Dl, Hl, Wl) -> (..., 2Dl, 2Hl, 2Wl); matches nn.Upsample(
    # scale_factor=2, mode='trilinear', align_corners=True).  Separable
    # per-axis linear interpolation with static (numpy) indices / weights,
    # batched over all leading axes (B and both mask channels at once).
    def lerp(a, axis):
        n = a.shape[axis]
        m = 2 * n
        if n == 1:
            return jnp.repeat(a, 2, axis=axis)
        pos = np.arange(m, dtype=np.float64) * (n - 1) / (m - 1)
        i0 = np.floor(pos).astype(np.int32)
        i1 = np.minimum(i0 + 1, n - 1)
        w = (pos - i0).astype(np.float32)
        a0 = jnp.take(a, jnp.asarray(i0), axis=axis)
        a1 = jnp.take(a, jnp.asarray(i1), axis=axis)
        shp = [1] * a.ndim
        shp[axis] = m
        wj = jnp.asarray(w).reshape(shp)
        return a0 * (1.0 - wj) + a1 * wj

    for ax in (-3, -2, -1):
        x = lerp(x, x.ndim + ax)
    return x


def region_atten_forward(x_in, g_in_1, g_in_2, p):
    """x_in: (B, Cx, D, H, W); g_in_i: (B, Cg, D/2, H/2, W/2).  Returns (out1, out2)."""
    B, Cx, D, H, W = x_in.shape
    Cg = g_in_1.shape[1]
    Dl, Hl, Wl = D // 2, H // 2, W // 2
    S = D * H * W
    Sl = Dl * Hl * Wl

    # AvgPool3d(2, stride=2).  Pooling commutes with the folded (affine) 1x1
    # conv+BN, so pooling x_in first is exact and 8x cheaper.
    xp = x_in.reshape(B, Cx, Dl, 2, Hl, 2, Wl, 2).mean(axis=(3, 5, 7))

    # Channels-first token operand: a reshape + channel concat, no transposes.
    tokens = jnp.concatenate(
        [xp.reshape(B, Cx, Sl),
         g_in_1.reshape(B, Cg, Sl),
         g_in_2.reshape(B, Cg, Sl)], axis=1)                 # (B, Cx + 2*Cg, Sl)

    masks_low = mask_pallas(tokens, p['w_all_t'], p['b_all'],
                            p['w_relu_t'], p['b_relu'], Sl)  # (B, 2, Sl)
    masks_low = masks_low.reshape(B, 2, Dl, Hl, Wl)

    # One batched trilinear x2 upsample for both mask channels.
    masks = _upsample2x_trilinear_align_corners(masks_low).reshape(B, 2, S)

    o1, o2 = apply_masks_pallas(x_in.reshape(B, Cx, S), masks)
    return o1.reshape(B, Cx, D, H, W), o2.reshape(B, Cx, D, H, W)


# --------------------------------------------------------------------------- #
# Parameter construction (random, deterministic) with host-side BN folding
# --------------------------------------------------------------------------- #
def init_params(key, channel_x, channel_g, channel_num):
    ks = jax.random.split(key, 30)
    ki = iter(range(30))
    f32 = jnp.float32

    def conv(cin, cout, scale=0.15):
        w = scale * jax.random.normal(ks[next(ki)], (cin, cout), f32)
        b = 0.05 * jax.random.normal(ks[next(ki)], (cout,), f32)
        return w, b

    def bn(c):
        gamma = 1.0 + 0.1 * jax.random.normal(ks[next(ki)], (c,), f32)
        beta = 0.05 * jax.random.normal(ks[next(ki)], (c,), f32)
        mean = 0.05 * jax.random.normal(ks[next(ki)], (c,), f32)
        var = jnp.abs(0.5 + 0.1 * jax.random.normal(ks[next(ki)], (c,), f32)) + 0.1
        return gamma, beta, mean, var

    def fold(w, b, bn_params):
        gamma, beta, mean, var = bn_params
        s = gamma * jax.lax.rsqrt(var + _EPS)
        return w * s[None, :], (b - mean) * s + beta

    cx, cg, cn = channel_x, channel_g, channel_num
    wx1, bx1 = fold(*conv(cx, cn), bn(cn))    # Conv_x_1 + BN_x_1
    wx2, bx2 = fold(*conv(cx, cn), bn(cn))    # Conv_x_2 + BN_x_2
    wg1, bg1 = fold(*conv(cg, cn), bn(cn))    # Conv_g_1 + BN_g_1
    wg2, bg2 = fold(*conv(cg, cn), bn(cn))    # Conv_g_2 + BN_g_2
    wr, br = fold(*conv(2 * cn, 3), bn(3))    # Conv_relu + BN_relu

    # Block-structured combined weight so that
    #   W_all^T @ [xp ; g1 ; g2]  ==  [ x1_int + g1_int ; x2_int + g2_int ]
    # (the cat() operand of the reference), in channels-first layout.
    w_all = jnp.zeros((cx + 2 * cg, 2 * cn), f32)
    w_all = w_all.at[:cx, :cn].set(wx1).at[:cx, cn:].set(wx2)
    w_all = w_all.at[cx:cx + cg, :cn].set(wg1)
    w_all = w_all.at[cx + cg:, cn:].set(wg2)
    b_all = jnp.concatenate([bx1 + bg1, bx2 + bg2])

    return dict(
        w_all_t=jnp.transpose(w_all),          # (2*Cn, Cx + 2*Cg)
        b_all=b_all.reshape(-1, 1),            # (2*Cn, 1)
        w_relu_t=jnp.transpose(wr),            # (3, 2*Cn)
        b_relu=br.reshape(-1, 1),              # (3, 1)
    )


# --------------------------------------------------------------------------- #
if __name__ == "__main__":
    key = jax.random.PRNGKey(0)
    B, Cx, Cg, Cn = 2, 8, 8, 8
    D = H = W = 16

    k1, k2, k3, kp = jax.random.split(key, 4)
    x_in = jax.random.normal(k1, (B, Cx, D, H, W), jnp.float32)
    g_in_1 = jax.random.normal(k2, (B, Cg, D // 2, H // 2, W // 2), jnp.float32)
    g_in_2 = jax.random.normal(k3, (B, Cg, D // 2, H // 2, W // 2), jnp.float32)
    params = init_params(kp, Cx, Cg, Cn)

    fwd = jax.jit(region_atten_forward)
    out1, out2 = fwd(x_in, g_in_1, g_in_2, params)
    out1 = jax.block_until_ready(out1)
    out2 = jax.block_until_ready(out2)

    assert out1.shape == (B, Cx, D, H, W) and out2.shape == (B, Cx, D, H, W)
    assert bool(jnp.all(jnp.isfinite(out1))) and bool(jnp.all(jnp.isfinite(out2)))
    print("KERNEL_OK")
</pallas_src>

<mosaic_0001>
module attributes {stable_mosaic.version = 11 : i64} {
  func.func @_mask_kernel(%arg0: i32, %arg1: i32, %arg2: memref<1x24x512xf32, #tpu.memory_space<vmem>>, %arg3: memref<16x24xf32, #tpu.memory_space<vmem>>, %arg4: memref<16x1xf32, #tpu.memory_space<vmem>>, %arg5: memref<3x16xf32, #tpu.memory_space<vmem>>, %arg6: memref<3x1xf32, #tpu.memory_space<vmem>>, %arg7: memref<1x2x512xf32, #tpu.memory_space<vmem>>) attributes {dimension_semantics = [#tpu.dimension_semantics<parallel>, #tpu.dimension_semantics<parallel>], iteration_bounds = array<i64: 2, 1>, scalar_prefetch = 0 : i64, scratch_operands = 0 : i64, tpu.core_type = #tpu.core_type<tc>, window_params = [{transform_indices = @transform_0, window_bounds = array<i64: 1, 24, 512>}, {pipeline_mode = #tpu.pipeline_mode<synchronous>, transform_indices = @transform_1, window_bounds = array<i64: 16, 24>}, {pipeline_mode = #tpu.pipeline_mode<synchronous>, transform_indices = @transform_2, window_bounds = array<i64: 16, 1>}, {pipeline_mode = #tpu.pipeline_mode<synchronous>, transform_indices = @transform_3, window_bounds = array<i64: 3, 16>}, {pipeline_mode = #tpu.pipeline_mode<synchronous>, transform_indices = @transform_4, window_bounds = array<i64: 3, 1>}, {transform_indices = @transform_5, window_bounds = array<i64: 1, 2, 512>}]} {
    %c0 = arith.constant 0 : index
    %c0_0 = arith.constant 0 : index
    %c0_1 = arith.constant 0 : index
    %0 = vector.load %arg2[%c0, %c0_0, %c0_1] : memref<1x24x512xf32, #tpu.memory_space<vmem>>, vector<1x24x512xf32>
    %1 = vector.shape_cast %0 : vector<1x24x512xf32> to vector<24x512xf32>
    %c0_2 = arith.constant 0 : index
    %c0_3 = arith.constant 0 : index
    %2 = vector.load %arg3[%c0_2, %c0_3] : memref<16x24xf32, #tpu.memory_space<vmem>>, vector<16x24xf32>
    %cst = arith.constant dense<0.000000e+00> : vector<16x512xf32>
    %3 = tpu.matmul %2, %1, %cst {dimension_numbers = #tpu.dot_dimension_numbers<[1], [0], [0], [1], [0, 0, 1, 1], [], []>} : vector<16x24xf32>, vector<24x512xf32>, vector<16x512xf32> -> vector<16x512xf32>
    %c0_4 = arith.constant 0 : index
    %c0_5 = arith.constant 0 : index
    %4 = vector.load %arg4[%c0_4, %c0_5] : memref<16x1xf32, #tpu.memory_space<vmem>>, vector<16x1xf32>
    %5 = vector.broadcast %4 : vector<16x1xf32> to vector<16x512xf32>
    %6 = arith.addf %3, %5 : vector<16x512xf32>
    %cst_6 = arith.constant 0.000000e+00 : f32
    %7 = vector.broadcast %cst_6 : f32 to vector<16x512xf32>
    %8 = arith.maximumf %6, %7 : vector<16x512xf32>
    %c0_7 = arith.constant 0 : index
    %c0_8 = arith.constant 0 : index
    %9 = vector.load %arg5[%c0_7, %c0_8] : memref<3x16xf32, #tpu.memory_space<vmem>>, vector<3x16xf32>
    %cst_9 = arith.constant dense<0.000000e+00> : vector<3x512xf32>
    %10 = tpu.matmul %9, %8, %cst_9 {dimension_numbers = #tpu.dot_dimension_numbers<[1], [0], [0], [1], [0, 0, 1, 1], [], []>} : vector<3x16xf32>, vector<16x512xf32>, vector<3x512xf32> -> vector<3x512xf32>
    %c0_10 = arith.constant 0 : index
    %c0_11 = arith.constant 0 : index
    %11 = vector.load %arg6[%c0_10, %c0_11] : memref<3x1xf32, #tpu.memory_space<vmem>>, vector<3x1xf32>
    %12 = vector.broadcast %11 : vector<3x1xf32> to vector<3x512xf32>
    %13 = arith.addf %10, %12 : vector<3x512xf32>
    %14 = vector.extract_strided_slice %13 {offsets = [0, 0], sizes = [1, 512], strides = [1, 1]} : vector<3x512xf32> to vector<1x512xf32>
    %15 = vector.extract_strided_slice %13 {offsets = [1, 0], sizes = [1, 512], strides = [1, 1]} : vector<3x512xf32> to vector<1x512xf32>
    %16 = vector.extract_strided_slice %13 {offsets = [2, 0], sizes = [1, 512], strides = [1, 1]} : vector<3x512xf32> to vector<1x512xf32>
    %17 = arith.maximumf %14, %15 : vector<1x512xf32>
    %18 = arith.maximumf %17, %16 : vector<1x512xf32>
    %19 = vector.broadcast %18 : vector<1x512xf32> to vector<3x512xf32>
    %20 = arith.subf %13, %19 : vector<3x512xf32>
    %21 = math.exp %20 : vector<3x512xf32>
    %22 = vector.extract_strided_slice %21 {offsets = [0, 0], sizes = [1, 512], strides = [1, 1]} : vector<3x512xf32> to vector<1x512xf32>
    %23 = vector.extract_strided_slice %21 {offsets = [1, 0], sizes = [1, 512], strides = [1, 1]} : vector<3x512xf32> to vector<1x512xf32>
    %24 = arith.addf %22, %23 : vector<1x512xf32>
    %25 = vector.extract_strided_slice %21 {offsets = [2, 0], sizes = [1, 512], strides = [1, 1]} : vector<3x512xf32> to vector<1x512xf32>
    %26 = arith.addf %24, %25 : vector<1x512xf32>
    %27 = tpu.reciprocal %26 {approx = true} : vector<1x512xf32> -> vector<1x512xf32>
    %28 = vector.extract_strided_slice %21 {offsets = [0, 0], sizes = [2, 512], strides = [1, 1]} : vector<3x512xf32> to vector<2x512xf32>
    %29 = vector.broadcast %27 : vector<1x512xf32> to vector<2x512xf32>
    %30 = arith.mulf %28, %29 : vector<2x512xf32>
    %c0_12 = arith.constant 0 : index
    %c0_13 = arith.constant 0 : index
    %c0_14 = arith.constant 0 : index
    %31 = vector.load %arg7[%c0_12, %c0_13, %c0_14] : memref<1x2x512xf32, #tpu.memory_space<vmem>>, vector<1x2x512xf32>
    %32 = vector.shape_cast %31 : vector<1x2x512xf32> to vector<2x512xf32>
    %33 = vector.shape_cast %30 : vector<2x512xf32> to vector<1x2x512xf32>
    tpu.vector_store %arg7[%c0_12, %c0_13, %c0_14], %33 {strides = array<i32>} : memref<1x2x512xf32, #tpu.memory_space<vmem>>, vector<1x2x512xf32>,
    return
  }
  func.func @transform_0(%arg0: i32, %arg1: i32) -> (i32, i32, i32) {
    %c0_i32 = arith.constant 0 : i32
    %c0_i32_0 = arith.constant 0 : i32
    return %arg0, %c0_i32, %arg1 : i32, i32, i32
  }
  func.func @transform_1(%arg0: i32, %arg1: i32) -> (i32, i32) {
    %c0_i32 = arith.constant 0 : i32
    %c0_i32_0 = arith.constant 0 : i32
    %c0_i32_1 = arith.constant 0 : i32
    return %c0_i32, %c0_i32_0 : i32, i32
  }
  func.func @transform_2(%arg0: i32, %arg1: i32) -> (i32, i32) {
    %c0_i32 = arith.constant 0 : i32
    %c0_i32_0 = arith.constant 0 : i32
    %c0_i32_1 = arith.constant 0 : i32
    return %c0_i32, %c0_i32_0 : i32, i32
  }
  func.func @transform_3(%arg0: i32, %arg1: i32) -> (i32, i32) {
    %c0_i32 = arith.constant 0 : i32
    %c0_i32_0 = arith.constant 0 : i32
    %c0_i32_1 = arith.constant 0 : i32
    return %c0_i32, %c0_i32_0 : i32, i32
  }
  func.func @transform_4(%arg0: i32, %arg1: i32) -> (i32, i32) {
    %c0_i32 = arith.constant 0 : i32
    %c0_i32_0 = arith.constant 0 : i32
    %c0_i32_1 = arith.constant 0 : i32
    return %c0_i32, %c0_i32_0 : i32, i32
  }
  func.func @transform_5(%arg0: i32, %arg1: i32) -> (i32, i32, i32) {
    %c0_i32 = arith.constant 0 : i32
    %c0_i32_0 = arith.constant 0 : i32
    return %arg0, %c0_i32, %arg1 : i32, i32, i32
  }
}

module attributes {stable_mosaic.version = 11 : i64} {
  func.func @_apply_kernel(%arg0: i32, %arg1: i32, %arg2: memref<1x8x4096xf32, #tpu.memory_space<vmem>>, %arg3: memref<1x2x4096xf32, #tpu.memory_space<vmem>>, %arg4: memref<1x8x4096xf32, #tpu.memory_space<vmem>>, %arg5: memref<1x8x4096xf32, #tpu.memory_space<vmem>>) attributes {dimension_semantics = [#tpu.dimension_semantics<parallel>, #tpu.dimension_semantics<parallel>], iteration_bounds = array<i64: 2, 1>, scalar_prefetch = 0 : i64, scratch_operands = 0 : i64, tpu.core_type = #tpu.core_type<tc>, window_params = [{transform_indices = @transform_0, window_bounds = array<i64: 1, 8, 4096>}, {transform_indices = @transform_1, window_bounds = array<i64: 1, 2, 4096>}, {transform_indices = @transform_2, window_bounds = array<i64: 1, 8, 4096>}, {transform_indices = @transform_3, window_bounds = array<i64: 1, 8, 4096>}]} {
    %c0 = arith.constant 0 : index
    %c0_0 = arith.constant 0 : index
    %c0_1 = arith.constant 0 : index
    %0 = vector.load %arg2[%c0, %c0_0, %c0_1] : memref<1x8x4096xf32, #tpu.memory_space<vmem>>, vector<1x8x4096xf32>
    %c0_2 = arith.constant 0 : index
    %c0_3 = arith.constant 0 : index
    %c0_4 = arith.constant 0 : index
    %1 = vector.load %arg3[%c0_2, %c0_3, %c0_4] : memref<1x2x4096xf32, #tpu.memory_space<vmem>>, vector<1x2x4096xf32>
    %2 = vector.extract_strided_slice %1 {offsets = [0, 0, 0], sizes = [1, 1, 4096], strides = [1, 1, 1]} : vector<1x2x4096xf32> to vector<1x1x4096xf32>
    %3 = vector.broadcast %2 : vector<1x1x4096xf32> to vector<1x8x4096xf32>
    %4 = arith.mulf %0, %3 : vector<1x8x4096xf32>
    %c0_5 = arith.constant 0 : index
    %c0_6 = arith.constant 0 : index
    %c0_7 = arith.constant 0 : index
    %5 = vector.load %arg4[%c0_5, %c0_6, %c0_7] : memref<1x8x4096xf32, #tpu.memory_space<vmem>>, vector<1x8x4096xf32>
    tpu.vector_store %arg4[%c0_5, %c0_6, %c0_7], %4 {strides = array<i32>} : memref<1x8x4096xf32, #tpu.memory_space<vmem>>, vector<1x8x4096xf32>,
    %6 = vector.extract_strided_slice %1 {offsets = [0, 1, 0], sizes = [1, 1, 4096], strides = [1, 1, 1]} : vector<1x2x4096xf32> to vector<1x1x4096xf32>
    %7 = vector.broadcast %6 : vector<1x1x4096xf32> to vector<1x8x4096xf32>
    %8 = arith.mulf %0, %7 : vector<1x8x4096xf32>
    %c0_8 = arith.constant 0 : index
    %c0_9 = arith.constant 0 : index
    %c0_10 = arith.constant 0 : index
    %9 = vector.load %arg5[%c0_8, %c0_9, %c0_10] : memref<1x8x4096xf32, #tpu.memory_space<vmem>>, vector<1x8x4096xf32>
    tpu.vector_store %arg5[%c0_8, %c0_9, %c0_10], %8 {strides = array<i32>} : memref<1x8x4096xf32, #tpu.memory_space<vmem>>, vector<1x8x4096xf32>,
    return
  }
  func.func @transform_0(%arg0: i32, %arg1: i32) -> (i32, i32, i32) {
    %c0_i32 = arith.constant 0 : i32
    %c0_i32_0 = arith.constant 0 : i32
    return %arg0, %c0_i32, %arg1 : i32, i32, i32
  }
  func.func @transform_1(%arg0: i32, %arg1: i32) -> (i32, i32, i32) {
    %c0_i32 = arith.constant 0 : i32
    %c0_i32_0 = arith.constant 0 : i32
    return %arg0, %c0_i32, %arg1 : i32, i32, i32
  }
  func.func @transform_2(%arg0: i32, %arg1: i32) -> (i32, i32, i32) {
    %c0_i32 = arith.constant 0 : i32
    %c0_i32_0 = arith.constant 0 : i32
    return %arg0, %c0_i32, %arg1 : i32, i32, i32
  }
  func.func @transform_3(%arg0: i32, %arg1: i32) -> (i32, i32, i32) {
    %c0_i32 = arith.constant 0 : i32
    %c0_i32_0 = arith.constant 0 : i32
    return %arg0, %c0_i32, %arg1 : i32, i32, i32
  }
}

</mosaic_0001>

<bundles_post_ra>
// kernel: region_atten_forward.2
= control target key start
LH: loop header
LB: loop body
LE: loop exit
PB: predicated region body
PF: predicated region fallthrough
CT: control target
= control target key end

     0   :  { %s796_s18 = smov 0   ;;  %s798_s19 = smov 0   ;;  %s863_s0 = inlined_call_operand.vmem [shape: f32[2,24,512], index: 0, kind: input, shape index: {}]   ;;  %s864_s1 = inlined_call_operand.vmem [shape: f32[16,24], index: 1, kind: input, shape index: {}]   ;;  %s865_s2 = inlined_call_operand.vmem [shape: f32[16,1], index: 2, kind: input, shape index: {}]   ;;  %s866_s3 = inlined_call_operand.vmem [shape: f32[3,16], index: 3, kind: input, shape index: {}]   ;;  %s867_s4 = inlined_call_operand.vmem [shape: f32[3,1], index: 4, kind: input, shape index: {}]   ;;  %s868_s5 = inlined_call_operand.vmem [shape: f32[2,2,512], index: 5, kind: output, shape index: {}]  }
   0x1   :  { %s800_s20 = smov 0  }
   0x2 LB: > { %s27_s21 = sadd.s32 1, %s759_s19  ;;  %p678_p0 = scmp.ge.s32.totalorder %s763_s20, 1  ;;  %s763_s20 = sphi %s800_s20, %s15_s20   ;;  %s759_s19 = sphi %s798_s19, %s870_s19   ;;  %s755_s18 = sphi %s796_s18, %s869_s18  }
   0x3   : > { %p29_p1 = scmp.ge.s32.totalorder %s27_s21, 2  ;;  %p208_p2 = scmp.lt.s32.totalorder %s763_s20, 3 }
   0x5   : > { %s872_s21 = smov (%p29_p1, %s27_s21), 0  ;;  %p209_p3 = pnand %p678_p0, %p208_p2 }
   0x6   : > { %p245_p4 = scmp.lt.s32.totalorder (!%p209_p3), %s755_s18, 1 }
   0x7   : > { %212 = sbr.rel (%p209_p3) target bundleno = 346 (0x15a), region = 40 }
   0xc   : > { %v279_v0 = vld [vmem:[%s865_s2 + $0x8] sm:$0xff]  ;;  %v765_v1 = vmov 0   ;;  %s874_s18 = smov (!%p245_p4, %s755_s18), 1  ;;  %v276_v13 = vld [vmem:[%s864_s1] sm:$0xff]  ;;  %vm290_vm0 = vcmask 195584   ;;  %vm404_vm1 = vcmask 130048  }
   0xd   : > { %723 = vset.pattern.permute.xlu0 %v765_v1  ;;  %724 = vset.pattern.permute.xlu1 %v765_v1  ;;  %s697_s24 = smul.u32 96, %s874_s18  ;;  %v278_v15 = vld [vmem:[%s865_s2] sm:$0xff]  ;;  %v277_v16 = vld [vmem:[%s864_s1 + $0x8] sm:$0xff]  ;;  %s696_s13 = sshll.u32 %s874_s18, 3  ;;  %vm579_vm2 = vcmask 1041408   ;;  %vm581_vm3 = vcmask 1045508  }
   0xe   : > { %287 = vperm.xlu0 %723, %v279_v0   ;;  %v398_v17 = vld [vmem:[%s867_s4] sm:$0x7]  ;;  %vm583_vm4 = vcmask 1043456   ;;  %s262_s16 = scalar_lea.vmem %s868_s5, %s696_s13 }
   0xf   : > { %s252_s27 = scalar_lea.vmem %s863_s0, %s697_s24  ;;  %401 = vperm.xlu1 %724, %v398_v17   ;;  %v397_v32 = vld [vmem:[%s866_s3] sm:$0x7] }
  0x10   : > { %v273_v2 = vld [vmem:[%s252_s27 + $0x48] sm:$0xff]  ;;  %v274_v3 = vld [vmem:[%s252_s27 + $0x50] sm:$0xff]  ;;  %v275_v4 = vld [vmem:[%s252_s27 + $0x58] sm:$0xff] }
  0x11   : > { %333 = vmatpush.msra.mxu1 %v273_v2  ;;  %356 = vmatpush.msra.mxu2 %v274_v3  ;;  %v272_v5 = vld [vmem:[%s252_s27 + $0x40] sm:$0xff]  ;;  %v269_v6 = vld [vmem:[%s252_s27 + $0x28] sm:$0xff]  ;;  %v270_v7 = vld [vmem:[%s252_s27 + $0x30] sm:$0xff] }
  0x12   : > { %379 = vmatpush.msra.mxu3 %v275_v4  ;;  %310 = vmatpush.msra.mxu0 %v272_v5  ;;  %v271_v8 = vld [vmem:[%s252_s27 + $0x38] sm:$0xff]  ;;  %v268_v9 = vld [vmem:[%s252_s27 + $0x20] sm:$0xff]  ;;  %v265_v10 = vld [vmem:[%s252_s27 + $0x8] sm:$0xff] }
  0x13   : > { %334 = vmatpush.msra.mxu1 %v269_v6  ;;  %357 = vmatpush.msra.mxu2 %v270_v7  ;;  %v266_v11 = vld [vmem:[%s252_s27 + $0x10] sm:$0xff]  ;;  %v267_v12 = vld [vmem:[%s252_s27 + $0x18] sm:$0xff]  ;;  %v264_v14 = vld [vmem:[%s252_s27] sm:$0xff] }
  0x14   : > { %380 = vmatpush.msra.mxu3 %v271_v8  ;;  %311 = vmatpush.msra.mxu0 %v268_v9 }
  0x15   : > { %335 = vmatpush.msra.mxu1 %v265_v10  ;;  %358 = vmatpush.msra.mxu2 %v266_v11 }
  0x16   : > { %381 = vmatpush.msra.mxu3 %v267_v12  ;;  %684 = vmatmul.msk.f32.vlgmr.msra.gmra.mxu1 %vm290_vm0, %v276_v13 }
  0x17   : > { %686 = vmatmul.msk.f32.vlgmr.msra.gmra.mxu2 %vm290_vm0, %v276_v13  ;;  %688 = vmatmul.msk.f32.vlgmr.msra.gmra.mxu3 %vm290_vm0, %v276_v13 }
  0x18   : > { %312 = vmatpush.msra.mxu0 %v264_v14  ;;  %282 = vperm.xlu0 %723, %v278_v15  }
  0x19   : > { %682 = vmatmul.msk.f32.vlgmr.msra.gmra.mxu0 %vm290_vm0, %v276_v13 }
  0x1e   : > { %685 = vmatmul.msk.f32.gmra.mxu1 %vm290_vm0, %v277_v16 }
  0x1f   : > { %687 = vmatmul.msk.f32.gmra.mxu2 %vm290_vm0, %v277_v16  ;;  %689 = vmatmul.msk.f32.gmra.mxu3 %vm290_vm0, %v277_v16 }
  0x21   : > { %683 = vmatmul.msk.f32.gmra.mxu0 %vm290_vm0, %v277_v16 }
  0x80   : > { %v288_v18 = vpop.permute.xlu0 %287 }
  0x81   : > { %v402_v45 = vpop.permute.xlu1 %401 }
  0x8a   : > { %v283_v23 = vpop.permute.xlu0 %282 }
  0x93   : > { %v337_v19 = vpop.f32.mrf.mxu1 }
  0x94   : > { %v338_v26 = vadd.f32 %v337_v19, %v283_v23 }
  0x96   : > { %v314_v20 = vpop.f32.mrf.mxu0  ;;  %v390_v31 = vmax.f32 %v338_v26, 0.0 }
  0x97   : > { %v315_v30 = vadd.f32 %v314_v20, %v283_v23 }
  0x99   : > { %v389_v40 = vmax.f32 %v315_v30, 0.0 }
  0x9a   : > { %v360_v21 = vpop.f32.mrf.mxu2  ;;  %v383_v22 = vpop.f32.mrf.mxu3 }
  0x9b   : > { %v340_v24 = vpop.f32.mrf.mxu1  ;;  %v361_v34 = vadd.f32 %v360_v21, %v283_v23  ;;  %v384_v37 = vadd.f32 %v383_v22, %v283_v23 }
  0x9c   : > { %v341_v25 = vadd.f32 %v340_v24, %v288_v18 }
  0x9d   : > { %v391_v43 = vmax.f32 %v361_v34, 0.0  ;;  %v392_v44 = vmax.f32 %v384_v37, 0.0 }
  0x9e   : > { %v394_v27 = vmax.f32 %v341_v25, 0.0  ;;  %v317_v28 = vpop.f32.mrf.mxu0 }
  0x9f   : > { %v318_v29 = vadd.f32 %v317_v28, %v288_v18 }
  0xa0   : > { %442 = vmatpush.msrb.mxu1 %v394_v27 }
  0xa1   : > { %v393_v33 = vmax.f32 %v318_v29, 0.0 }
  0xa2   : > { %v363_v35 = vpop.f32.mrf.mxu2  ;;  %v386_v36 = vpop.f32.mrf.mxu3  ;;  %443 = vmatpush.msrb.mxu1 %v390_v31 }
  0xa3   : > { %v364_v38 = vadd.f32 %v363_v35, %v288_v18  ;;  %v387_v39 = vadd.f32 %v386_v36, %v288_v18  ;;  %422 = vmatpush.msrb.mxu0 %v393_v33  ;;  %691 = vmatmul.msk.f32.vlgmr.msrb.gmra.mxu1 %vm404_vm1, %v397_v32 }
  0xa5   : > { %v395_v41 = vmax.f32 %v364_v38, 0.0  ;;  %v396_v42 = vmax.f32 %v387_v39, 0.0  ;;  %423 = vmatpush.msrb.mxu0 %v389_v40 }
  0xa6   : > { %690 = vmatmul.msk.f32.vlgmr.msrb.gmra.mxu0 %vm404_vm1, %v397_v32 }
  0xa7   : > { %462 = vmatpush.msrb.mxu2 %v395_v41  ;;  %482 = vmatpush.msrb.mxu3 %v396_v42 }
  0xa9   : > { %463 = vmatpush.msrb.mxu2 %v391_v43  ;;  %483 = vmatpush.msrb.mxu3 %v392_v44 }
  0xaa   : > { %692 = vmatmul.msk.f32.vlgmr.msrb.gmra.mxu2 %vm404_vm1, %v397_v32  ;;  %693 = vmatmul.msk.f32.vlgmr.msrb.gmra.mxu3 %vm404_vm1, %v397_v32 }
 0x120   : > { %v445_v46 = vpop.f32.mrf.mxu1 }
 0x121   : > { %v446_v47 = vadd.f32 %v445_v46, %v402_v45 }
 0x123   : > { %v493_v48 = vrot.slane %v446_v47, 1  ;;  %v505_v49 = vrot.slane %v446_v47, 2  ;;  %v425_v50 = vpop.f32.mrf.mxu0 }
 0x124   : > { %v426_v51 = vadd.f32 %v425_v50, %v402_v45 }
 0x125   : > { %v501_v52 = vmax.f32 %v446_v47, %v493_v48 }
 0x126   : > { %v492_v53 = vrot.slane %v426_v51, 1  ;;  %v504_v54 = vrot.slane %v426_v51, 2 }
 0x127   : > { %v513_v55 = vmax.f32 %v501_v52, %v505_v49 }
 0x128   : > { %v500_v56 = vmax.f32 %v426_v51, %v492_v53 }
 0x129   : > { %v517_v57 = vperm.slane %v513_v55, 0 }
 0x12a   : > { %v512_v58 = vmax.f32 %v500_v56, %v504_v54 }
 0x12b   : > { %v521_v59 = vsub.f32 %v446_v47, %v517_v57 }
 0x12c   : > { %v516_v60 = vperm.slane %v512_v58, 0 }
 0x12d   : > { %v526_v61 = vmul.f32 1.442695, %v521_v59  ;;  %v465_v62 = vpop.f32.mrf.mxu2  ;;  %v485_v63 = vpop.f32.mrf.mxu3 }
 0x12e   : > { %v520_v0 = vsub.f32 %v426_v51, %v516_v60  ;;  %v466_v1 = vadd.f32 %v465_v62, %v402_v45  ;;  %v486_v2 = vadd.f32 %v485_v63, %v402_v45 }
 0x12f   : > { %725 = vpow2.f32 %v526_v61 }
 0x130   : > { %v524_v3 = vmul.f32 1.442695, %v520_v0  ;;  %v494_v4 = vrot.slane %v466_v1, 1  ;;  %v495_v5 = vrot.slane %v486_v2, 1  ;;  %v506_v7 = vrot.slane %v466_v1, 2 }
 0x131   : > { %v507_v9 = vrot.slane %v486_v2, 2 }
 0x132   : > { %v502_v6 = vmax.f32 %v466_v1, %v494_v4  ;;  %v503_v8 = vmax.f32 %v486_v2, %v495_v5  ;;  %727 = vpow2.f32 %v524_v3 }
 0x134   : > { %v514_v10 = vmax.f32 %v502_v6, %v506_v7  ;;  %v515_v11 = vmax.f32 %v503_v8, %v507_v9 }
 0x135   : > { %v726_v12 = vpop.eup %725 }
 0x136   : > { %v518_v13 = vperm.slane %v514_v10, 0  ;;  %v519_v14 = vperm.slane %v515_v11, 0  ;;  %v537_v15 = vrot.slane %v726_v12, 1  ;;  %v549_v22 = vrot.slane %v726_v12, 2 }
 0x138   : > { %v522_v16 = vsub.f32 %v466_v1, %v518_v13  ;;  %v523_v17 = vsub.f32 %v486_v2, %v519_v14  ;;  %v728_v18 = vpop.eup %727  ;;  %v545_v21 = vadd.f32 %v726_v12, %v537_v15 }
 0x139   : > { %v536_v23 = vrot.slane %v728_v18, 1  ;;  %v548_v26 = vrot.slane %v728_v18, 2 }
 0x13a   : > { %v528_v19 = vmul.f32 1.442695, %v522_v16  ;;  %v530_v20 = vmul.f32 1.442695, %v523_v17  ;;  %v557_v24 = vadd.f32 %v549_v22, %v545_v21 }
 0x13b   : > { %v544_v25 = vadd.f32 %v728_v18, %v536_v23 }
 0x13c   : > { %729 = vpow2.f32 %v528_v19 }
 0x13d   : > { %731 = vpow2.f32 %v530_v20  ;;  %v556_v30 = vadd.f32 %v548_v26, %v544_v25 }
 0x13e   : > { %733 = vrcp.f32 %v557_v24 }
 0x13f   : > { %735 = vrcp.f32 %v556_v30 }
 0x142   : > { %v730_v27 = vpop.eup %729 }
 0x143   : > { %v732_v28 = vpop.eup %731  ;;  %v538_v29 = vrot.slane %v730_v27, 1  ;;  %v550_v33 = vrot.slane %v730_v27, 2 }
 0x144   : > { %v539_v31 = vrot.slane %v732_v28, 1  ;;  %v551_v35 = vrot.slane %v732_v28, 2  ;;  %v734_v37 = vpop.eup %733 }
 0x145   : > { %v546_v32 = vadd.f32 %v730_v27, %v538_v29  ;;  %v565_v39 = vperm.slane %v734_v37, 0  ;;  %v736_v40 = vpop.eup %735 }
 0x146   : > { %v547_v34 = vadd.f32 %v732_v28, %v539_v31  ;;  %v564_v45 = vperm.slane %v736_v40, 0 }
 0x147   : > { %v558_v36 = vadd.f32 %v550_v33, %v546_v32  ;;  %v569_v42 = vmul.f32 %v726_v12, %v565_v39 }
 0x148   : > { %v559_v38 = vadd.f32 %v551_v35, %v547_v34  ;;  %v568_v51 = vmul.f32 %v728_v18, %v564_v45 }
 0x149   : > { %737 = vrcp.f32 %v558_v36  ;;  %v576_v48 = vrot.slane %v569_v42, 6 }
 0x14a   : > { %739 = vrcp.f32 %v559_v38 }
 0x14b   : > { %v580_v53 = vsel %vm579_vm2, %v568_v51, %v576_v48 }
 0x14f   : > { %v738_v41 = vpop.eup %737 }
 0x150   : > { %v740_v43 = vpop.eup %739  ;;  %v566_v44 = vperm.slane %v738_v41, 0 }
 0x151   : > { %v567_v46 = vperm.slane %v740_v43, 0 }
 0x152   : > { %v570_v47 = vmul.f32 %v730_v27, %v566_v44 }
 0x153   : > { %v571_v49 = vmul.f32 %v732_v28, %v567_v46 }
 0x154   : > { %v577_v50 = vrot.slane %v570_v47, 4 }
 0x155   : > { %v578_v52 = vrot.slane %v571_v49, 2 }
 0x157   : > { %v582_v54 = vsel %vm581_vm3, %v577_v50, %v578_v52 }
 0x158   : > { %v584_v55 = vsel %vm583_vm4, %v580_v53, %v582_v54 }
 0x159   : > { %586 = vst [vmem:[%s262_s16] sm:$0xff] %v584_v55 }
 0x15a PF: > { %s15_s20 = sadd.s32 1, %s763_s20   ;;  %s869_s18 = smov %s759_s19 }
 0x15b   : > { %p12_p5 = scmp.ge.s32.totalorder %s15_s20, 4   ;;  %s870_s19 = smov %s872_s21 }
 0x15d   :  { %14 = sbr.rel (!%p12_p5) target bundleno = 2 (0x2), region = 70 }

// kernel: region_atten_forward.3
= control target key start
LH: loop header
LB: loop body
LE: loop exit
PB: predicated region body
PF: predicated region fallthrough
CT: control target
= control target key end

     0   :  { %s880_s12 = smov 0   ;;  %s882_s13 = smov 0   ;;  %s1244_s0 = inlined_call_operand.vmem [shape: f32[2,8,4096], index: 0, kind: input, shape index: {}]   ;;  %s1245_s1 = inlined_call_operand.vmem [shape: f32[2,2,4096], index: 1, kind: input, shape index: {}]   ;;  %s1246_s2 = inlined_call_operand.vmem [shape: f32[2,8,4096], index: 2, kind: output, shape index: {0}]   ;;  %s1247_s3 = inlined_call_operand.vmem [shape: f32[2,8,4096], index: 3, kind: output, shape index: {1}]  }
   0x1   :  { %s884_s14 = smov 0  }
   0x2 LB: > { %s26_s15 = sadd.s32 1, %s854_s13  ;;  %p797_p0 = scmp.ge.s32.totalorder %s858_s14, 1  ;;  %s858_s14 = sphi %s884_s14, %s14_s14   ;;  %s854_s13 = sphi %s882_s13, %s1249_s13   ;;  %s850_s12 = sphi %s880_s12, %s1248_s12  }
   0x3   : > { %p28_p1 = scmp.ge.s32.totalorder %s26_s15, 2  ;;  %p180_p2 = scmp.lt.s32.totalorder %s858_s14, 3 }
   0x5   : > { %s1251_s15 = smov (%p28_p1, %s26_s15), 0  ;;  %p181_p3 = pnand %p797_p0, %p180_p2 }
   0x6   : > { %p231_p4 = scmp.lt.s32.totalorder (!%p181_p3), %s850_s12, 1 }
   0x7   : > { %184 = sbr.rel (%p181_p3) target bundleno = 86 (0x56), region = 28 }
   0xc   : > { %s1253_s12 = smov (!%p231_p4, %s850_s12), 1 }
   0xd   : > { %s898_s16 = sshll.u32 %s1253_s12, 8  ;;  %s809_s17 = sshll.u32 %s1253_s12, 6 }
   0xe   : > { %s904_s20 = scalar_lea.vmem %s1244_s0, %s898_s16  ;;  %s909_s23 = scalar_lea.vmem %s1245_s1, %s809_s17 }
   0xf   : > { %v912_v0 = vld [vmem:[%s909_s23] sm:$0xff]  ;;  %v919_v3 = vld [vmem:[%s904_s20 + $0x8] sm:$0xff]  ;;  %v925_v7 = vld [vmem:[%s904_s20 + $0x10] sm:$0xff]  ;;  %s937_s26 = scalar_lea.vmem %s1246_s2, %s898_s16  ;;  %s1144_s29 = scalar_lea.vmem %s1247_s3, %s898_s16 }
  0x10   : > { %v915_v1 = vld [vmem:[%s904_s20] sm:$0xff]  ;;  %v318_v2 = vperm.slane %v912_v0, 0  ;;  %v319_v4 = vperm.slane %v912_v0, 2  ;;  %v320_v5 = vperm.slane %v912_v0, 4  ;;  %v321_v6 = vperm.slane %v912_v0, 6  ;;  %v928_v8 = vld [vmem:[%s904_s20 + $0x18] sm:$0xff] }
  0x11   : > { %v931_v9 = vld [vmem:[%s909_s23 + $0x8] sm:$0xff]  ;;  %v940_v14 = vld [vmem:[%s904_s20 + $0x20] sm:$0xff]  ;;  %v947_v19 = vld [vmem:[%s909_s23 + $0x10] sm:$0xff] }
  0x12   : > { %v382_v10 = vperm.slane %v318_v2, 0  ;;  %v383_v11 = vperm.slane %v319_v4, 0  ;;  %v384_v12 = vperm.slane %v320_v5, 0  ;;  %v385_v13 = vperm.slane %v321_v6, 0  ;;  %v954_v24 = vld [vmem:[%s904_s20 + $0x28] sm:$0xff]  ;;  %v957_v25 = vld [vmem:[%s904_s20 + $0x30] sm:$0xff] }
  0x13   : > { %v322_v15 = vperm.slane %v931_v9, 0  ;;  %v323_v16 = vperm.slane %v931_v9, 2  ;;  %v324_v17 = vperm.slane %v931_v9, 4  ;;  %v325_v18 = vperm.slane %v931_v9, 6  ;;  %v960_v26 = vld [vmem:[%s904_s20 + $0x38] sm:$0xff]  ;;  %v976_v40 = vld [vmem:[%s904_s20 + $0x40] sm:$0xff] }
  0x14   : > { %v414_v20 = vmul.f32 %v382_v10, %v915_v1  ;;  %v415_v21 = vmul.f32 %v383_v11, %v919_v3  ;;  %v416_v22 = vmul.f32 %v384_v12, %v925_v7  ;;  %v417_v23 = vmul.f32 %v385_v13, %v928_v8  ;;  %v968_v35 = vld [vmem:[%s909_s23 + $0x18] sm:$0xff]  ;;  %v979_v41 = vld [vmem:[%s904_s20 + $0x48] sm:$0xff]  ;;  %v983_v44 = vld [vmem:[%s904_s20 + $0x50] sm:$0xff] }
  0x15   : > { %v386_v27 = vperm.slane %v322_v15, 0  ;;  %v387_v28 = vperm.slane %v323_v16, 0  ;;  %v388_v29 = vperm.slane %v324_v17, 0  ;;  %v389_v30 = vperm.slane %v325_v18, 0  ;;  %v991_v51 = vld [vmem:[%s909_s23 + $0x20] sm:$0xff]  ;;  %v996_v53 = vld [vmem:[%s904_s20 + $0x58] sm:$0xff] }
  0x16   : > { %446 = vst [vmem:[%s937_s26] sm:$0xff] %v414_v20  ;;  %v326_v31 = vperm.slane %v947_v19, 0  ;;  %v327_v32 = vperm.slane %v947_v19, 2  ;;  %v328_v33 = vperm.slane %v947_v19, 4  ;;  %v329_v34 = vperm.slane %v947_v19, 6  ;;  %v1002_v56 = vld [vmem:[%s904_s20 + $0x60] sm:$0xff]  ;;  %v1005_v58 = vld [vmem:[%s904_s20 + $0x68] sm:$0xff] }
  0x17   : > { %447 = vst [vmem:[%s937_s26 + $0x8] sm:$0xff] %v415_v21  ;;  %v418_v36 = vmul.f32 %v386_v27, %v940_v14  ;;  %v419_v37 = vmul.f32 %v387_v28, %v954_v24  ;;  %v420_v38 = vmul.f32 %v388_v29, %v957_v25  ;;  %v421_v39 = vmul.f32 %v389_v30, %v960_v26  ;;  %v1012_v2 = vld [vmem:[%s909_s23 + $0x28] sm:$0xff]  ;;  %v1017_v5 = vld [vmem:[%s904_s20 + $0x70] sm:$0xff]  ;;  %v1023_v12 = vld [vmem:[%s904_s20 + $0x78] sm:$0xff] }
  0x18   : > { %448 = vst [vmem:[%s937_s26 + $0x10] sm:$0xff] %v416_v22  ;;  %v390_v42 = vperm.slane %v326_v31, 0  ;;  %v391_v43 = vperm.slane %v327_v32, 0  ;;  %v392_v45 = vperm.slane %v328_v33, 0  ;;  %v393_v46 = vperm.slane %v329_v34, 0  ;;  %v1028_v16 = vld [vmem:[%s904_s20 + $0x80] sm:$0xff] }
  0x19   : > { %449 = vst [vmem:[%s937_s26 + $0x18] sm:$0xff] %v417_v23  ;;  %v330_v47 = vperm.slane %v968_v35, 0  ;;  %v331_v48 = vperm.slane %v968_v35, 2  ;;  %v332_v49 = vperm.slane %v968_v35, 4  ;;  %v333_v50 = vperm.slane %v968_v35, 6  ;;  %v1033_v21 = vld [vmem:[%s909_s23 + $0x30] sm:$0xff] }
  0x1a   : > { %450 = vst [vmem:[%s937_s26 + $0x20] sm:$0xff] %v418_v36  ;;  %v422_v52 = vmul.f32 %v390_v42, %v976_v40  ;;  %v423_v54 = vmul.f32 %v391_v43, %v979_v41  ;;  %v424_v55 = vmul.f32 %v392_v45, %v983_v44  ;;  %v334_v61 = vperm.slane %v991_v51, 0  ;;  %v1038_v23 = vld [vmem:[%s904_s20 + $0x88] sm:$0xff]  ;;  %v1044_v30 = vld [vmem:[%s904_s20 + $0x90] sm:$0xff]  ;;  %v1050_v34 = vld [vmem:[%s904_s20 + $0x98] sm:$0xff] }
  0x1b   : > { %451 = vst [vmem:[%s937_s26 + $0x28] sm:$0xff] %v419_v37  ;;  %v394_v57 = vperm.slane %v330_v47, 0  ;;  %v395_v59 = vperm.slane %v331_v48, 0  ;;  %v396_v60 = vperm.slane %v332_v49, 0  ;;  %v335_v62 = vperm.slane %v991_v51, 2  ;;  %v1060_v45 = vld [vmem:[%s909_s23 + $0x38] sm:$0xff] }
  0x1c   : > { %452 = vst [vmem:[%s937_s26 + $0x30] sm:$0xff] %v420_v38  ;;  %v336_v63 = vperm.slane %v991_v51, 4  ;;  %v425_v4 = vmul.f32 %v393_v46, %v996_v53  ;;  %v397_v6 = vperm.slane %v333_v50, 0  ;;  %v337_v10 = vperm.slane %v991_v51, 6  ;;  %v1065_v47 = vld [vmem:[%s904_s20 + $0xa8] sm:$0xff] }
  0x1d   : > { %453 = vst [vmem:[%s937_s26 + $0x38] sm:$0xff] %v421_v39  ;;  %v426_v11 = vmul.f32 %v394_v57, %v1002_v56  ;;  %v398_v13 = vperm.slane %v334_v61, 0  ;;  %v427_v15 = vmul.f32 %v395_v59, %v1005_v58  ;;  %v399_v17 = vperm.slane %v335_v62, 0  ;;  %v1056_v39 = vld [vmem:[%s904_s20 + $0xa0] sm:$0xff]  ;;  %v1077_v59 = vld [vmem:[%s904_s20 + $0xb8] sm:$0xff] }
  0x1e   : > { %454 = vst [vmem:[%s937_s26 + $0x40] sm:$0xff] %v422_v52  ;;  %v338_v18 = vperm.slane %v1012_v2, 0  ;;  %v339_v20 = vperm.slane %v1012_v2, 2  ;;  %v428_v22 = vmul.f32 %v396_v60, %v1017_v5  ;;  %v400_v27 = vperm.slane %v336_v63, 0  ;;  %v1071_v52 = vld [vmem:[%s904_s20 + $0xb0] sm:$0xff]  ;;  %v1083_v63 = vld [vmem:[%s904_s20 + $0xc0] sm:$0xff] }
  0x1f   : > { %455 = vst [vmem:[%s937_s26 + $0x48] sm:$0xff] %v423_v54  ;;  %v340_v28 = vperm.slane %v1012_v2, 4  ;;  %v429_v29 = vmul.f32 %v397_v6, %v1023_v12  ;;  %v401_v31 = vperm.slane %v337_v10, 0  ;;  %v341_v32 = vperm.slane %v1012_v2, 6 }
  0x20   : > { %456 = vst [vmem:[%s937_s26 + $0x50] sm:$0xff] %v424_v55  ;;  %v430_v33 = vmul.f32 %v398_v13, %v1028_v16  ;;  %v402_v36 = vperm.slane %v338_v18, 0  ;;  %v342_v37 = vperm.slane %v1033_v21, 0  ;;  %v431_v38 = vmul.f32 %v399_v17, %v1038_v23  ;;  %v1095_v18 = vld [vmem:[%s904_s20 + $0xd0] sm:$0xff] }
  0x21   : > { %457 = vst [vmem:[%s937_s26 + $0x58] sm:$0xff] %v425_v4  ;;  %v403_v42 = vperm.slane %v339_v20, 0  ;;  %v343_v43 = vperm.slane %v1033_v21, 2  ;;  %v432_v46 = vmul.f32 %v400_v27, %v1044_v30  ;;  %v404_v48 = vperm.slane %v340_v28, 0  ;;  %v1101_v28 = vld [vmem:[%s904_s20 + $0xd8] sm:$0xff] }
  0x22   : > { %458 = vst [vmem:[%s937_s26 + $0x60] sm:$0xff] %v426_v11  ;;  %v344_v49 = vperm.slane %v1033_v21, 4  ;;  %v433_v50 = vmul.f32 %v401_v31, %v1050_v34  ;;  %v405_v54 = vperm.slane %v341_v32, 0  ;;  %v345_v55 = vperm.slane %v1033_v21, 6  ;;  %v1089_v11 = vld [vmem:[%s904_s20 + $0xc8] sm:$0xff] }
  0x23   : > { %459 = vst [vmem:[%s937_s26 + $0x68] sm:$0xff] %v427_v15  ;;  %v434_v57 = vmul.f32 %v402_v36, %v1056_v39  ;;  %v406_v60 = vperm.slane %v342_v37, 0  ;;  %v346_v61 = vperm.slane %v1060_v45, 0  ;;  %v435_v62 = vmul.f32 %v403_v42, %v1065_v47  ;;  %v1113_v42 = vld [vmem:[%s904_s20 + $0xe8] sm:$0xff] }
  0x24   : > { %460 = vst [vmem:[%s937_s26 + $0x70] sm:$0xff] %v428_v22  ;;  %v407_v4 = vperm.slane %v343_v43, 0  ;;  %v347_v6 = vperm.slane %v1060_v45, 2  ;;  %v436_v10 = vmul.f32 %v404_v48, %v1071_v52  ;;  %v408_v13 = vperm.slane %v344_v49, 0  ;;  %v1119_v49 = vld [vmem:[%s904_s20 + $0xf0] sm:$0xff] }
  0x25   : > { %461 = vst [vmem:[%s937_s26 + $0x78] sm:$0xff] %v429_v29  ;;  %v348_v15 = vperm.slane %v1060_v45, 4  ;;  %v437_v17 = vmul.f32 %v405_v54, %v1077_v59  ;;  %v409_v20 = vperm.slane %v345_v55, 0  ;;  %v349_v22 = vperm.slane %v1060_v45, 6 }
  0x26   : > { %462 = vst [vmem:[%s937_s26 + $0x80] sm:$0xff] %v430_v33  ;;  %v438_v27 = vmul.f32 %v406_v60, %v1083_v63  ;;  %v410_v29 = vperm.slane %v346_v61, 0  ;;  %v478_v31 = vperm.slane %v912_v0, 1  ;;  %v439_v32 = vmul.f32 %v407_v4, %v1089_v11  ;;  %v1107_v33 = vld [vmem:[%s904_s20 + $0xe0] sm:$0xff] }
  0x27   : > { %463 = vst [vmem:[%s937_s26 + $0x88] sm:$0xff] %v431_v38  ;;  %v411_v36 = vperm.slane %v347_v6, 0  ;;  %v479_v37 = vperm.slane %v912_v0, 3  ;;  %v440_v38 = vmul.f32 %v408_v13, %v1095_v18  ;;  %v412_v43 = vperm.slane %v348_v15, 0 }
  0x28   : > { %464 = vst [vmem:[%s937_s26 + $0x90] sm:$0xff] %v432_v46  ;;  %v480_v46 = vperm.slane %v912_v0, 5  ;;  %v441_v48 = vmul.f32 %v409_v20, %v1101_v28  ;;  %v481_v54 = vperm.slane %v912_v0, 7  ;;  %v442_v55 = vmul.f32 %v410_v29, %v1107_v33 }
  0x29   : > { %465 = vst [vmem:[%s937_s26 + $0x98] sm:$0xff] %v433_v50  ;;  %v413_v50 = vperm.slane %v349_v22, 0  ;;  %v542_v60 = vperm.slane %v478_v31, 1  ;;  %v482_v61 = vperm.slane %v931_v9, 1  ;;  %v543_v4 = vperm.slane %v479_v37, 1 }
  0x2a   : > { %466 = vst [vmem:[%s937_s26 + $0xa0] sm:$0xff] %v434_v57  ;;  %v1125_v57 = vld [vmem:[%s904_s20 + $0xf8] sm:$0xff]  ;;  %v483_v6 = vperm.slane %v931_v9, 3  ;;  %v444_v0 = vmul.f32 %v412_v43, %v1119_v49  ;;  %v484_v13 = vperm.slane %v931_v9, 5  ;;  %v485_v20 = vperm.slane %v931_v9, 7 }
  0x2b   : > { %467 = vst [vmem:[%s937_s26 + $0xa8] sm:$0xff] %v435_v62  ;;  %v443_v62 = vmul.f32 %v411_v36, %v1113_v42  ;;  %v445_v15 = vmul.f32 %v413_v50, %v1125_v57  ;;  %v574_v22 = vmul.f32 %v542_v60, %v915_v1  ;;  %v486_v29 = vperm.slane %v947_v19, 1 }
  0x2c   : > { %468 = vst [vmem:[%s937_s26 + $0xb0] sm:$0xff] %v436_v10  ;;  %v544_v10 = vperm.slane %v480_v46, 1  ;;  %v575_v31 = vmul.f32 %v543_v4, %v919_v3  ;;  %v487_v36 = vperm.slane %v947_v19, 3  ;;  %v548_v9 = vperm.slane %v484_v13, 1 }
  0x2d   : > { %469 = vst [vmem:[%s937_s26 + $0xb8] sm:$0xff] %v437_v17  ;;  %v545_v17 = vperm.slane %v481_v54, 1  ;;  %v488_v37 = vperm.slane %v947_v19, 5  ;;  %v549_v43 = vperm.slane %v485_v20, 1  ;;  %v489_v46 = vperm.slane %v947_v19, 7 }
  0x2e   : > { %470 = vst [vmem:[%s937_s26 + $0xc0] sm:$0xff] %v438_v27  ;;  %v546_v27 = vperm.slane %v482_v61, 1  ;;  %v576_v1 = vmul.f32 %v544_v10, %v925_v7  ;;  %v490_v50 = vperm.slane %v968_v35, 1  ;;  %v551_v54 = vperm.slane %v487_v36, 1 }
  0x2f   : > { %471 = vst [vmem:[%s937_s26 + $0xc8] sm:$0xff] %v439_v32  ;;  %v547_v32 = vperm.slane %v483_v6, 1  ;;  %v552_v60 = vperm.slane %v488_v37, 1  ;;  %v492_v19 = vperm.slane %v968_v35, 5  ;;  %v553_v61 = vperm.slane %v489_v46, 1 }
  0x30   : > { %472 = vst [vmem:[%s937_s26 + $0xd0] sm:$0xff] %v440_v38  ;;  %v577_v38 = vmul.f32 %v545_v17, %v928_v8  ;;  %v578_v3 = vmul.f32 %v546_v27, %v940_v14  ;;  %v580_v8 = vmul.f32 %v548_v9, %v957_v25  ;;  %v581_v14 = vmul.f32 %v549_v43, %v960_v26 }
  0x31   : > { %473 = vst [vmem:[%s937_s26 + $0xd8] sm:$0xff] %v441_v48  ;;  %v550_v48 = vperm.slane %v486_v29, 1  ;;  %v579_v7 = vmul.f32 %v547_v32, %v954_v24  ;;  %v554_v4 = vperm.slane %v490_v50, 1  ;;  %v494_v6 = vperm.slane %v991_v51, 1 }
  0x32   : > { %474 = vst [vmem:[%s937_s26 + $0xe0] sm:$0xff] %v442_v55  ;;  %v491_v55 = vperm.slane %v968_v35, 3  ;;  %v583_v25 = vmul.f32 %v551_v54, %v979_v41  ;;  %v495_v10 = vperm.slane %v991_v51, 3  ;;  %v584_v26 = vmul.f32 %v552_v60, %v983_v44 }
  0x33   : > { %475 = vst [vmem:[%s937_s26 + $0xe8] sm:$0xff] %v443_v62  ;;  %v493_v62 = vperm.slane %v968_v35, 7  ;;  %v582_v24 = vmul.f32 %v550_v48, %v976_v40  ;;  %v556_v13 = vperm.slane %v492_v19, 1  ;;  %v496_v35 = vperm.slane %v991_v51, 5 }
  0x34   : > { %476 = vst [vmem:[%s937_s26 + $0xf0] sm:$0xff] %v444_v0  ;;  %v555_v0 = vperm.slane %v491_v55, 1  ;;  %v585_v40 = vmul.f32 %v553_v61, %v996_v53  ;;  %v497_v17 = vperm.slane %v991_v51, 7  ;;  %v586_v41 = vmul.f32 %v554_v4, %v1002_v56 }
  0x35   : > { %477 = vst [vmem:[%s937_s26 + $0xf8] sm:$0xff] %v445_v15  ;;  %v557_v15 = vperm.slane %v493_v62, 1  ;;  %v558_v20 = vperm.slane %v494_v6, 1  ;;  %v559_v27 = vperm.slane %v495_v10, 1  ;;  %v499_v29 = vperm.slane %v1012_v2, 3 }
  0x36   : > { %606 = vst [vmem:[%s1144_s29] sm:$0xff] %v574_v22  ;;  %v498_v22 = vperm.slane %v1012_v2, 1  ;;  %v587_v44 = vmul.f32 %v555_v0, %v1005_v58  ;;  %v588_v53 = vmul.f32 %v556_v13, %v1017_v5  ;;  %v500_v51 = vperm.slane %v1012_v2, 5 }
  0x37   : > { %607 = vst [vmem:[%s1144_s29 + $0x8] sm:$0xff] %v575_v31  ;;  %v560_v31 = vperm.slane %v496_v35, 1  ;;  %v589_v56 = vmul.f32 %v557_v15, %v1023_v12  ;;  %v561_v32 = vperm.slane %v497_v17, 1  ;;  %v501_v36 = vperm.slane %v1012_v2, 7 }
  0x38   : > { %608 = vst [vmem:[%s1144_s29 + $0x10] sm:$0xff] %v576_v1  ;;  %v590_v58 = vmul.f32 %v558_v20, %v1028_v16  ;;  %v562_v1 = vperm.slane %v498_v22, 1  ;;  %v502_v9 = vperm.slane %v1033_v21, 1  ;;  %v591_v5 = vmul.f32 %v559_v27, %v1038_v23 }
  0x39   : > { %609 = vst [vmem:[%s1144_s29 + $0x18] sm:$0xff] %v577_v38  ;;  %v563_v37 = vperm.slane %v499_v29, 1  ;;  %v503_v38 = vperm.slane %v1033_v21, 3  ;;  %v592_v12 = vmul.f32 %v560_v31, %v1044_v30  ;;  %v564_v43 = vperm.slane %v500_v51, 1 }
  0x3a   : > { %610 = vst [vmem:[%s1144_s29 + $0x20] sm:$0xff] %v578_v3  ;;  %v504_v2 = vperm.slane %v1033_v21, 5  ;;  %v593_v16 = vmul.f32 %v561_v32, %v1050_v34  ;;  %v565_v46 = vperm.slane %v501_v36, 1  ;;  %v505_v3 = vperm.slane %v1033_v21, 7 }
  0x3b   : > { %611 = vst [vmem:[%s1144_s29 + $0x28] sm:$0xff] %v579_v7  ;;  %v594_v23 = vmul.f32 %v562_v1, %v1056_v39  ;;  %v566_v48 = vperm.slane %v502_v9, 1  ;;  %v506_v50 = vperm.slane %v1060_v45, 1  ;;  %v595_v30 = vmul.f32 %v563_v37, %v1065_v47 }
  0x3c   : > { %612 = vst [vmem:[%s1144_s29 + $0x30] sm:$0xff] %v580_v8  ;;  %v567_v7 = vperm.slane %v503_v38, 1  ;;  %v507_v54 = vperm.slane %v1060_v45, 3  ;;  %v596_v34 = vmul.f32 %v564_v43, %v1071_v52  ;;  %v568_v21 = vperm.slane %v504_v2, 1 }
  0x3d   : > { %613 = vst [vmem:[%s1144_s29 + $0x38] sm:$0xff] %v581_v14  ;;  %v508_v55 = vperm.slane %v1060_v45, 5  ;;  %v597_v39 = vmul.f32 %v565_v46, %v1077_v59  ;;  %v569_v8 = vperm.slane %v505_v3, 1  ;;  %v509_v60 = vperm.slane %v1060_v45, 7 }
  0x3e   : > { %614 = vst [vmem:[%s1144_s29 + $0x40] sm:$0xff] %v582_v24  ;;  %v598_v47 = vmul.f32 %v566_v48, %v1083_v63  ;;  %v570_v19 = vperm.slane %v506_v50, 1  ;;  %v599_v52 = vmul.f32 %v567_v7, %v1089_v11  ;;  %v571_v14 = vperm.slane %v507_v54, 1 }
  0x3f   : > { %615 = vst [vmem:[%s1144_s29 + $0x48] sm:$0xff] %v583_v25  ;;  %v600_v59 = vmul.f32 %v568_v21, %v1095_v18  ;;  %v572_v61 = vperm.slane %v508_v55, 1  ;;  %v601_v45 = vmul.f32 %v569_v8, %v1101_v28  ;;  %v573_v62 = vperm.slane %v509_v60, 1 }
  0x40   : > { %616 = vst [vmem:[%s1144_s29 + $0x50] sm:$0xff] %v584_v26  ;;  %v602_v63 = vmul.f32 %v570_v19, %v1107_v33  ;;  %v603_v24 = vmul.f32 %v571_v14, %v1113_v42 }
  0x41   : > { %617 = vst [vmem:[%s1144_s29 + $0x58] sm:$0xff] %v585_v40  ;;  %v604_v11 = vmul.f32 %v572_v61, %v1119_v49  ;;  %v605_v4 = vmul.f32 %v573_v62, %v1125_v57 }
  0x42   : > { %618 = vst [vmem:[%s1144_s29 + $0x60] sm:$0xff] %v586_v41 }
  0x43   : > { %619 = vst [vmem:[%s1144_s29 + $0x68] sm:$0xff] %v587_v44 }
  0x44   : > { %620 = vst [vmem:[%s1144_s29 + $0x70] sm:$0xff] %v588_v53 }
  0x45   : > { %621 = vst [vmem:[%s1144_s29 + $0x78] sm:$0xff] %v589_v56 }
  0x46   : > { %622 = vst [vmem:[%s1144_s29 + $0x80] sm:$0xff] %v590_v58 }
  0x47   : > { %623 = vst [vmem:[%s1144_s29 + $0x88] sm:$0xff] %v591_v5 }
  0x48   : > { %624 = vst [vmem:[%s1144_s29 + $0x90] sm:$0xff] %v592_v12 }
  0x49   : > { %625 = vst [vmem:[%s1144_s29 + $0x98] sm:$0xff] %v593_v16 }
  0x4a   : > { %626 = vst [vmem:[%s1144_s29 + $0xa0] sm:$0xff] %v594_v23 }
  0x4b   : > { %627 = vst [vmem:[%s1144_s29 + $0xa8] sm:$0xff] %v595_v30 }
  0x4c   : > { %628 = vst [vmem:[%s1144_s29 + $0xb0] sm:$0xff] %v596_v34 }
  0x4d   : > { %629 = vst [vmem:[%s1144_s29 + $0xb8] sm:$0xff] %v597_v39 }
  0x4e   : > { %630 = vst [vmem:[%s1144_s29 + $0xc0] sm:$0xff] %v598_v47 }
  0x4f   : > { %631 = vst [vmem:[%s1144_s29 + $0xc8] sm:$0xff] %v599_v52 }
  0x50   : > { %632 = vst [vmem:[%s1144_s29 + $0xd0] sm:$0xff] %v600_v59 }
  0x51   : > { %633 = vst [vmem:[%s1144_s29 + $0xd8] sm:$0xff] %v601_v45 }
  0x52   : > { %634 = vst [vmem:[%s1144_s29 + $0xe0] sm:$0xff] %v602_v63 }
  0x53   : > { %635 = vst [vmem:[%s1144_s29 + $0xe8] sm:$0xff] %v603_v24 }
  0x54   : > { %636 = vst [vmem:[%s1144_s29 + $0xf0] sm:$0xff] %v604_v11 }
  0x55   : > { %637 = vst [vmem:[%s1144_s29 + $0xf8] sm:$0xff] %v605_v4 }
  0x56 PF: > { %s14_s14 = sadd.s32 1, %s858_s14   ;;  %s1248_s12 = smov %s854_s13 }
  0x57   : > { %p11_p5 = scmp.ge.s32.totalorder %s14_s14, 4   ;;  %s1249_s13 = smov %s1251_s15 }
  0x59   :  { %13 = sbr.rel (!%p11_p5) target bundleno = 2 (0x2), region = 73 }

</bundles_post_ra>
